<compile_context>
chip_gen: v7x
topology: tpu7x:2x2x1
jax: 0.10.0
libtpu: 0.0.40
codegen_flags: <defaults>
</compile_context>

<pallas_src>
import math

import jax
import jax.numpy as jnp
from jax.experimental import pallas as pl
from jax.experimental.pallas import tpu as pltpu


def _round_up(x: int, m: int) -> int:
    return ((x + m - 1) // m) * m


def _rope_kernel(aux_ref, out_ref):
    """Fill one (tile_r, width) tile of the packed RoPE frequency table.

    aux_ref : (2, width) f32
              row 0 = pack * scale * [inv_freq, inv_freq] tiled `pack` times
              row 1 = (lane_off + offset) * scale * inv_tiled
    out_ref : (tile_r, width)
              packed row r holds `pack` consecutive sequence positions laid
              out along the lane axis:
              out[r, l] = r * row0[l] + row1[l]
                        = ((r*pack + lane_off[l]) + offset) * scale * inv[l]
    """
    tile_r, width = out_ref.shape
    base = pl.program_id(0) * tile_r
    row = jax.lax.broadcasted_iota(jnp.int32, (tile_r, width), 0)
    r = (base + row).astype(jnp.float32)
    out_ref[...] = (r * aux_ref[0:1, :] + aux_ref[1:2, :]).astype(out_ref.dtype)


class RotaryPositionEmbedding:
    """JAX/Pallas port of the PyTorch RotaryPositionEmbedding module."""

    def __init__(self, dim, rotary_percent=1.0,
                 seq_len_interpolation_factor=None,
                 pretrained_max_position_embeddings=None,
                 output_dtype=jnp.float32):
        if rotary_percent < 1.0:
            dim = int(dim * rotary_percent)
        self.seq_len_interpolation_factor = seq_len_interpolation_factor
        self.pretrained_max_position_embeddings = pretrained_max_position_embeddings
        # f32 default matches the PyTorch module bit-for-bit semantics; bf16
        # halves writeback but rounds the angles (see header note).
        self.output_dtype = output_dtype

        # inv_freq = 1 / 10000**(arange(0, dim, 2)/dim), shape (dim//2,)
        self.inv_freq = 1.0 / (
            10000.0 ** (jnp.arange(0, dim, 2, dtype=jnp.float32) / dim)
        )
        half = self.inv_freq.shape[0]
        self.emb_dim = 2 * half              # output feature width

        # Lane-dense packing: pack consecutive positions along the lane axis
        # so the stored last dim is a multiple of 128 (full-width vst).
        self.pack = 128 // math.gcd(self.emb_dim, 128)
        self.width = self.pack * self.emb_dim

        inv_full = jnp.concatenate([self.inv_freq, self.inv_freq])       # (emb_dim,)
        self.inv_tiled = jnp.tile(inv_full, self.pack)                   # (width,)
        self.lane_off = (jnp.arange(self.width, dtype=jnp.int32)
                         // self.emb_dim).astype(jnp.float32)            # (width,)

    def __call__(self, max_seq_len: int, offset: int = 0, *, tile_rows=None):
        # Position-interpolation scaling (static Python, mirrors PyTorch).
        scale = 1.0
        if (self.pretrained_max_position_embeddings is not None
                and self.seq_len_interpolation_factor is not None):
            if max_seq_len > (self.pretrained_max_position_embeddings
                              * self.seq_len_interpolation_factor):
                scale = 1.0 / (max_seq_len / self.pretrained_max_position_embeddings)
            else:
                scale = 1.0 / self.seq_len_interpolation_factor

        pack, width, emb_dim = self.pack, self.width, self.emb_dim

        # Fold pack / scale / offset into the aux rows host-side: tiny XLA
        # ops per call, but the Pallas kernel itself never re-traces when
        # offset or scale change (only max_seq_len changes shapes).
        row0 = self.inv_tiled * jnp.float32(pack * scale)
        row1 = (self.lane_off + jnp.float32(offset)) * jnp.float32(scale) * self.inv_tiled
        aux = jnp.stack([row0, row1], axis=0)                            # (2, width)

        # Packed rows needed to cover max_seq_len positions; pad only to the
        # sublane multiple (8), never to tile_r, so the trailing wrapper slice
        # is a no-op in the common case.
        rows = pl.cdiv(max_seq_len, pack)
        rows_out = _round_up(rows, 8)

        dtype_bytes = jnp.dtype(self.output_dtype).itemsize
        # ~4 MiB of output per grid step: big enough to amortize per-step
        # overhead and hit the HBM-write roofline, small enough that the
        # double-buffered output (8 MiB) fits every generation's scoped VMEM.
        cap = max(8, ((4 << 20) // (width * dtype_bytes)) // 8 * 8)
        if tile_rows is not None:
            tile_r = max(8, _round_up(int(tile_rows), 8))
        else:
            # Keep at least 2 grid steps when possible so v7x's two
            # TensorCores each take half the writeback (no-op on v5e/v6e).
            half_rows = max(8, _round_up(pl.cdiv(rows_out, 2), 8))
            tile_r = min(cap, half_rows)
        tile_r = min(tile_r, rows_out)
        num_tiles = pl.cdiv(rows_out, tile_r)   # last block may be partial

        packed = pl.pallas_call(
            _rope_kernel,
            out_shape=jax.ShapeDtypeStruct((rows_out, width), self.output_dtype),
            grid=(num_tiles,),
            in_specs=[pl.BlockSpec((2, width), lambda i: (0, 0))],
            out_specs=pl.BlockSpec((tile_r, width), lambda i: (i, 0)),
            compiler_params=pltpu.CompilerParams(
                dimension_semantics=("parallel",)),
        )(aux)

        # Packed (rows_out, pack*emb_dim) -> (rows_out*pack, emb_dim); both
        # reshapes are row-major no-ops, and the slice only materializes when
        # max_seq_len is not a multiple of 8*pack (and then only drops < 8
        # packed rows).
        emb = packed.reshape(rows_out * pack, emb_dim)
        if rows_out * pack != max_seq_len:
            emb = emb[:max_seq_len]
        return emb.reshape(max_seq_len, 1, 1, emb_dim)


def _reference(rope: RotaryPositionEmbedding, max_seq_len: int, offset: int = 0):
    """Pure-JAX reference mirroring the PyTorch forward."""
    seq = jnp.arange(max_seq_len, dtype=jnp.float32) + offset
    if (rope.pretrained_max_position_embeddings is not None
            and rope.seq_len_interpolation_factor is not None):
        if max_seq_len > (rope.pretrained_max_position_embeddings
                          * rope.seq_len_interpolation_factor):
            seq = seq * (1.0 / (max_seq_len / rope.pretrained_max_position_embeddings))
        else:
            seq = seq * (1.0 / rope.seq_len_interpolation_factor)
    freqs = jnp.einsum("i,j->ij", seq, rope.inv_freq)
    emb = jnp.concatenate([freqs, freqs], axis=-1)
    return emb.reshape(emb.shape[0], 1, 1, emb.shape[1])


if __name__ == "__main__":
    # No learned weights in this module (inv_freq is analytic); key kept for
    # convention only.
    _ = jax.random.PRNGKey(0)

    # Case 1: plain RoPE, small dim (<128) exercises lane-dense packing.
    rope = RotaryPositionEmbedding(32)
    out = jax.block_until_ready(rope(8, offset=2))
    ref = _reference(rope, 8, offset=2)
    assert out.shape == (8, 1, 1, 32), out.shape
    assert jnp.allclose(out, ref, rtol=1e-5, atol=1e-6), "mismatch (plain)"

    # Case 2: sequence-length interpolation branch.
    rope_i = RotaryPositionEmbedding(
        32, seq_len_interpolation_factor=2,
        pretrained_max_position_embeddings=4)
    out_i = jax.block_until_ready(rope_i(16, offset=0))
    ref_i = _reference(rope_i, 16, offset=0)
    assert jnp.allclose(out_i, ref_i, rtol=1e-5, atol=1e-6), "mismatch (interp)"

    # Case 3: dim == 128 (pack == 1), non-multiple-of-8 seq length, and a
    # partial last output block (40 rows, two blocks of 24).
    rope_d = RotaryPositionEmbedding(128)
    out_d = jax.block_until_ready(rope_d(40, offset=1))
    ref_d = _reference(rope_d, 40, offset=1)
    assert out_d.shape == (40, 1, 1, 128), out_d.shape
    assert jnp.allclose(out_d, ref_d, rtol=1e-5, atol=1e-6), "mismatch (dim=128)"

    # Case 4: force multiple seq tiles (grid > 1) to exercise program_id math.
    out_m = jax.block_until_ready(rope(100, offset=3, tile_rows=8))
    ref_m = _reference(rope, 100, offset=3)
    assert jnp.allclose(out_m, ref_m, rtol=1e-5, atol=1e-6), "mismatch (multi-tile)"

    # Case 5: same offset called twice with a new value — shapes unchanged, so
    # no Mosaic recompile is required (offset lives in the aux input).
    out_o = jax.block_until_ready(rope(100, offset=7, tile_rows=8))
    ref_o = _reference(rope, 100, offset=7)
    assert jnp.allclose(out_o, ref_o, rtol=1e-5, atol=1e-6), "mismatch (new offset)"

    print("KERNEL_OK")
</pallas_src>

<mosaic_0001>
module attributes {stable_mosaic.version = 11 : i64} {
  func.func @_rope_kernel(%arg0: i32, %arg1: memref<2x128xf32, #tpu.memory_space<vmem>>, %arg2: memref<8x128xf32, #tpu.memory_space<vmem>>) attributes {dimension_semantics = [#tpu.dimension_semantics<parallel>], iteration_bounds = array<i64: 1>, scalar_prefetch = 0 : i64, scratch_operands = 0 : i64, tpu.core_type = #tpu.core_type<tc>, window_params = [{pipeline_mode = #tpu.pipeline_mode<synchronous>, transform_indices = @transform_0, window_bounds = array<i64: 2, 128>}, {transform_indices = @transform_1, window_bounds = array<i64: 8, 128>}]} {
    %c8_i32 = arith.constant 8 : i32
    %0 = arith.muli %arg0, %c8_i32 : i32
    %1 = tpu.iota {dimensions = array<i32: 0>} : vector<8x128xi32>
    %2 = vector.broadcast %0 : i32 to vector<8x128xi32>
    %3 = arith.addi %2, %1 : vector<8x128xi32>
    %4 = arith.sitofp %3 : vector<8x128xi32> to vector<8x128xf32>
    %c0 = arith.constant 0 : index
    %c0_0 = arith.constant 0 : index
    %5 = vector.load %arg1[%c0, %c0_0] : memref<2x128xf32, #tpu.memory_space<vmem>>, vector<1x128xf32>
    %6 = vector.broadcast %5 : vector<1x128xf32> to vector<8x128xf32>
    %7 = arith.mulf %4, %6 : vector<8x128xf32>
    %c1 = arith.constant 1 : index
    %c0_1 = arith.constant 0 : index
    %8 = vector.load %arg1[%c1, %c0_1] : memref<2x128xf32, #tpu.memory_space<vmem>>, vector<1x128xf32>
    %9 = vector.broadcast %8 : vector<1x128xf32> to vector<8x128xf32>
    %10 = arith.addf %7, %9 : vector<8x128xf32>
    %c0_2 = arith.constant 0 : index
    %c0_3 = arith.constant 0 : index
    %11 = vector.load %arg2[%c0_2, %c0_3] : memref<8x128xf32, #tpu.memory_space<vmem>>, vector<8x128xf32>
    tpu.vector_store %arg2[%c0_2, %c0_3], %10 {strides = array<i32>} : memref<8x128xf32, #tpu.memory_space<vmem>>, vector<8x128xf32>,
    return
  }
  func.func @transform_0(%arg0: i32) -> (i32, i32) {
    %c0_i32 = arith.constant 0 : i32
    %c0_i32_0 = arith.constant 0 : i32
    %c0_i32_1 = arith.constant 0 : i32
    return %c0_i32, %c0_i32_0 : i32, i32
  }
  func.func @transform_1(%arg0: i32) -> (i32, i32) {
    %c0_i32 = arith.constant 0 : i32
    %c0_i32_0 = arith.constant 0 : i32
    return %arg0, %c0_i32 : i32, i32
  }
}

</mosaic_0001>

<bundles_post_ra>
// kernel: tpu_custom_call.1
= control target key start
LH: loop header
LB: loop body
LE: loop exit
PB: predicated region body
PF: predicated region fallthrough
CT: control target
= control target key end

     0   :  { %6 = vsyncpa [#allocation3], 0  ;;  %s143_s0 = inlined_call_operand.hbm [shape: f32[2,128], index: 0, kind: input, shape index: {}]   ;;  %s144_s1 = inlined_call_operand.hbm [shape: f32[8,128], index: 1, kind: output, shape index: {}]  }
   0x1   :  { %7 = vsyncpa [#allocation4], 0  ;;  %s107_s6 = smov [#allocation2]   ;;  %s59_s10 = scalar_lea.hbm %s143_s0, 32 }
   0x2   :  { %s14_s7 = sshll.u32 %s107_s6, 4  ;;  %p60_p0 = scmp.ne.s32.totalorder %s143_s0, %s59_s10  ;;  %s15_s7 = int_to_ptr.vmem [resolvable:$true] %s14_s7 }
   0x3   :  { %p63_p1 = scmp.lt.u32.totalorder %s59_s10, %s143_s0 }
   0x5   :  { %p65_p2 = pnand %p63_p1, %p60_p0 }
   0x7   :  { %68 = shalt.err (!%p65_p2)
}
   0x8   :  { %s69_s15 = scalar_lea.vmem %s15_s7, 32  ;;  %p74_p4 = scmp.lt.s32.totalorder %s15_s7, %s15_s7 }
   0x9   :  { %p70_p3 = scmp.ne.s32.totalorder %s15_s7, %s69_s15  ;;  %p75_p5 = scmp.lt.s32.totalorder %s69_s15, %s69_s15 }
   0xb   :  { %p76_p6 = por %p75_p5, %p74_p4 }
   0xd   :  { %p77_p7 = pnand %p76_p6, %p70_p3 }
   0xf   :  { %80 = shalt.err (!%p77_p7)
}
  0x10   :  { %17 = dma.hbm_to_vmem [thread:$0]  %s143_s0, 32, %s15_s7, [#allocation3]  }
  0x11   :  { %103 = dma.done.wait [#allocation3], 32  }
  0x12   :  { %104 = vsyncadd [#allocation3], 4294967264  ;;  %v22_v0 = vlaneseq  ;;  %v55_v3 = vld [vmem:[#allocation2] ss:$0 sm:$0xff]  ;;  %v56_v4 = vld [vmem:[#allocation2 + $0x1] ss:$0 sm:$0xff] }
  0x13   :  { %s108_s18 = smov [#allocation5]  }
  0x14   :  { %v23_v1 = vshrl.u32 %v22_v0, 7  ;;  %s46_s19 = sshll.u32 %s108_s18, 4  ;;  %s47_s19 = int_to_ptr.vmem [resolvable:$true] %s46_s19 }
  0x15   :  { %s81_s20 = scalar_lea.vmem %s47_s19, 128  ;;  %p86_p9 = scmp.lt.s32.totalorder %s47_s19, %s47_s19 }
  0x16   :  { %v26_v2 = vcvt.s32.f32 %v23_v1  ;;  %p82_p8 = scmp.ne.s32.totalorder %s47_s19, %s81_s20  ;;  %p87_p10 = scmp.lt.s32.totalorder %s81_s20, %s81_s20 }
  0x18   :  { %v32_v5 = vmul.f32 %v55_v3, %v26_v2  ;;  %p88_p11 = por %p87_p10, %p86_p9 }
  0x1a   :  { %v38_v6 = vadd.f32 %v56_v4, %v32_v5  ;;  %p89_p12 = pnand %p88_p11, %p82_p8 }
  0x1c   :  { %39 = vst [vmem:[#allocation5] sm:$0xff] %v38_v6 }
  0x1d   :  { %92 = shalt.err (!%p89_p12)
}
  0x1e   :  { %s93_s22 = scalar_lea.hbm %s144_s1, 128 }
  0x1f   :  { %p94_p13 = scmp.ne.s32.totalorder %s144_s1, %s93_s22  ;;  %p97_p0 = scmp.lt.u32.totalorder %s93_s22, %s144_s1 }
  0x21   :  { %p99_p1 = pnand %p97_p0, %p94_p13 }
  0x23   :  { %102 = shalt.err (!%p99_p1)
}
  0x24   :  { %49 = dma.vmem_to_hbm [thread:$0]  %s47_s19, 128, %s144_s1, [#allocation4]  }
  0x25   :  { %105 = dma.done.wait [#allocation4], 128  }
  0x26   :  { %106 = vsyncadd [#allocation4], 4294967168 }
  0x27   :  { %53 = vsyncpa [#allocation3], 1 }
  0x28   :  { %54 = vsyncpa [#allocation4], 1 }

</bundles_post_ra>
